<compile_context>
chip_gen: v6e
topology: v6e:2x2x1
jax: 0.10.0
libtpu: 0.0.40
codegen_flags: <defaults>
</compile_context>

<pallas_src>
from functools import partial

import numpy as np
import jax
import jax.numpy as jnp
from jax.experimental import pallas as pl
from jax.experimental.pallas import tpu as pltpu

D_MODEL = 256   # transformer decoder_hidden / proj_fusion channels (fixed by module)
N_MELS = 80     # preprocess_config["preprocessing"]["mel"]["n_mel_channels"]
N_PHONES = 40   # model_config["Symbols"]["phonemenumber"]
LANE = 128      # lane-dense output width


# ---------------------------- Pallas kernel ----------------------------

def _fused_kernel(x_ref, wp_ref, wh_ref, bh_ref, wv_ref, bv_ref,
                  heads_ref, video_ref):
    # x: (tile, 256) f32 lip/aligned features -> bf16 for the MXU
    x = x_ref[...].astype(jnp.bfloat16)

    # proj_fusion: Conv1d(256, 256, kernel_size=1, bias=False) == channel matmul
    h = jnp.dot(x, wp_ref[...], preferred_element_type=jnp.float32)
    # TODO(synk): Decoder (FastSpeech2 transformer stack) source not provided; identity.

    # CTC_classifier_mel (40) and mel_linear (80) packed into one lane-dense
    # (tile, 128) output slab; bias add in f32.
    heads_ref[...] = (jnp.dot(h.astype(jnp.bfloat16), wh_ref[...],
                              preferred_element_type=jnp.float32)
                      + bh_ref[...]).astype(heads_ref.dtype)

    # TODO(synk): Multi_head_Duration_Aligner source not provided; its video-CTC
    # head is applied directly to the 256-d lip features (padded to 128 lanes).
    video_ref[...] = (jnp.dot(x, wv_ref[...],
                              preferred_element_type=jnp.float32)
                      + bv_ref[...]).astype(video_ref.dtype)


def _round_up(n, m):
    return ((n + m - 1) // m) * m


def _pick_tile(n_rows, max_tile=512):
    # Big MXU-shaped tile, but keep >= 2 grid steps so both v7x TensorCores get work.
    half = pl.cdiv(n_rows, 2)
    mult = 256 if half >= 256 else 8
    return min(max_tile, max(8, _round_up(half, mult)))


def fused_heads_pallas(x2d, wp, wh, bh, wv, bv):
    """x2d: (N, 256) f32.  Returns two (N, 128) f32 lane-dense output slabs."""
    N, D = x2d.shape
    tile = _pick_tile(N)
    n_pad = _round_up(N, tile)
    if n_pad != N:
        x2d = jnp.pad(x2d, ((0, n_pad - N), (0, 0)))
    grid = (n_pad // tile,)

    heads, video = pl.pallas_call(
        _fused_kernel,
        out_shape=(jax.ShapeDtypeStruct((n_pad, LANE), jnp.float32),
                   jax.ShapeDtypeStruct((n_pad, LANE), jnp.float32)),
        grid=grid,
        in_specs=[pl.BlockSpec((tile, D), lambda i: (i, 0)),
                  pl.BlockSpec((D, D), lambda i: (0, 0)),
                  pl.BlockSpec((D, LANE), lambda i: (0, 0)),
                  pl.BlockSpec((1, LANE), lambda i: (0, 0)),
                  pl.BlockSpec((D, LANE), lambda i: (0, 0)),
                  pl.BlockSpec((1, LANE), lambda i: (0, 0))],
        out_specs=(pl.BlockSpec((tile, LANE), lambda i: (i, 0)),
                   pl.BlockSpec((tile, LANE), lambda i: (i, 0))),
        compiler_params=pltpu.CompilerParams(
            dimension_semantics=("parallel",),
            vmem_limit_bytes=16 * 1024 * 1024),
    )(x2d, wp, wh, bh, wv, bv)
    return heads[:N], video[:N]


# ------------------------------ glue (JAX) ------------------------------

def get_mask_from_lengths(lengths, max_len):
    # mask[b, t] = (t >= lengths[b]); tiny -> plain jnp, no kernel launch.
    ids = jnp.arange(int(max_len), dtype=jnp.int32)[None, :]
    return ids >= lengths.astype(jnp.int32)[:, None]


def init_params(key):
    k = jax.random.split(key, 7)
    s = 0.02
    return {
        "proj_fusion_w": jax.random.normal(k[0], (D_MODEL, D_MODEL), jnp.float32) * s,
        "ctc_mel_w":     jax.random.normal(k[1], (D_MODEL, N_PHONES), jnp.float32) * s,
        "ctc_mel_b":     jax.random.normal(k[2], (1, N_PHONES), jnp.float32) * s,
        "mel_linear_w":  jax.random.normal(k[3], (D_MODEL, N_MELS), jnp.float32) * s,
        "mel_linear_b":  jax.random.normal(k[4], (1, N_MELS), jnp.float32) * s,
        "ctc_video_w":   jax.random.normal(k[5], (D_MODEL, N_PHONES), jnp.float32) * s,
        "ctc_video_b":   jax.random.normal(k[6], (1, N_PHONES), jnp.float32) * s,
    }


@partial(jax.jit, static_argnums=(3, 6, 11))  # max_src_len, max_mel_len, max_lip_lens
def hpm_dubb_1_forward(params, texts, src_lens, max_src_len, mels, mel_lens,
                       max_mel_len, pitches, energies, durations,
                       lip_lens, max_lip_lens, lip_embedding):
    sync = 4  # Synchronization_coefficient

    src_masks = get_mask_from_lengths(src_lens, max_src_len)
    lip_masks = get_mask_from_lengths(lip_lens, max_lip_lens)   # consumed by MDA (stand-in)
    mel_masks = get_mask_from_lengths(mel_lens, max_mel_len)    # useGT=True branch
    del lip_masks

    B, L, Dm = lip_embedding.shape

    # Pack weights lane-dense (128 columns) and cast matmul operands to bf16.
    wp = params["proj_fusion_w"].astype(jnp.bfloat16)
    wh = jnp.concatenate(
        [params["ctc_mel_w"], params["mel_linear_w"],
         jnp.zeros((D_MODEL, LANE - N_PHONES - N_MELS), jnp.float32)],
        axis=1).astype(jnp.bfloat16)
    bh = jnp.concatenate(
        [params["ctc_mel_b"], params["mel_linear_b"],
         jnp.zeros((1, LANE - N_PHONES - N_MELS), jnp.float32)], axis=1)
    wv = jnp.concatenate(
        [params["ctc_video_w"],
         jnp.zeros((D_MODEL, LANE - N_PHONES), jnp.float32)],
        axis=1).astype(jnp.bfloat16)
    bv = jnp.concatenate(
        [params["ctc_video_b"],
         jnp.zeros((1, LANE - N_PHONES), jnp.float32)], axis=1)

    # TODO(synk): Multi_head_Duration_Aligner source not provided; aligned features
    # are the 256-d lip_embedding itself.
    x2d = lip_embedding.reshape(B * L, Dm)

    # ===== fused kernel: proj_fusion -> (ctc_mel | mel) heads + video-CTC head =====
    heads2d, video2d = fused_heads_pallas(x2d, wp, wh, bh, wv, bv)

    ctc_mel_small = heads2d[:, :N_PHONES].reshape(B, L, N_PHONES)
    mel_small = heads2d[:, N_PHONES:N_PHONES + N_MELS].reshape(B, L, N_MELS)
    ctc_video_small = video2d[:, :N_PHONES].reshape(B, L, N_PHONES)

    # F.interpolate(mode='nearest') over time is a static row gather
    # (src = floor(t * L / T)); it commutes with the per-frame linear ops above,
    # so only the small head outputs are expanded to mel length.
    T = int(max_mel_len)
    idx = np.floor(np.arange(T) * (L / T)).astype(np.int32)
    fusion_output = jnp.take(mel_small, idx, axis=1)          # (B, T, 80)
    ctc_pred_mel = jnp.take(ctc_mel_small, idx, axis=1)       # (B, T, 40)
    ctc_pred_MDA_video = jnp.take(ctc_video_small, idx, axis=1)  # (B, T, 40)

    # TODO(synk): PostNet (5-layer conv residual net) source not provided;
    # the learned residual is omitted.
    postnet_output = fusion_output

    ctc_loss_all = [ctc_pred_MDA_video, ctc_pred_mel]
    return (fusion_output, postnet_output, src_masks, mel_masks,
            src_lens, lip_lens * sync, ctc_loss_all)


if __name__ == "__main__":
    key = jax.random.PRNGKey(0)
    kp, kl, km = jax.random.split(key, 3)

    B = 2
    max_src_len = 8
    max_lip_lens = 8
    max_mel_len = 16

    params = init_params(kp)

    texts = jnp.zeros((B, max_src_len), jnp.int32)
    src_lens = jnp.array([8, 6], jnp.int32)
    mel_lens = jnp.array([16, 12], jnp.int32)
    lip_lens = jnp.array([8, 5], jnp.int32)
    mels = jax.random.normal(km, (B, max_mel_len, N_MELS), jnp.float32)
    pitches = jnp.zeros((B, max_mel_len), jnp.float32)
    energies = jnp.zeros((B, max_mel_len), jnp.float32)
    durations = jnp.ones((B, max_src_len), jnp.int32)
    lip_embedding = jax.random.normal(kl, (B, max_lip_lens, D_MODEL), jnp.float32)

    outs = hpm_dubb_1_forward(params, texts, src_lens, max_src_len, mels,
                              mel_lens, max_mel_len, pitches, energies,
                              durations, lip_lens, max_lip_lens, lip_embedding)
    jax.block_until_ready(outs)
    print("KERNEL_OK")
</pallas_src>

<mosaic_0001>
module attributes {stable_mosaic.version = 11 : i64} {
  func.func @_fused_kernel(%arg0: i32, %arg1: memref<8x256xf32, #tpu.memory_space<vmem>>, %arg2: memref<256x256xbf16, #tpu.memory_space<vmem>>, %arg3: memref<256x128xbf16, #tpu.memory_space<vmem>>, %arg4: memref<1x128xf32, #tpu.memory_space<vmem>>, %arg5: memref<256x128xbf16, #tpu.memory_space<vmem>>, %arg6: memref<1x128xf32, #tpu.memory_space<vmem>>, %arg7: memref<8x128xf32, #tpu.memory_space<vmem>>, %arg8: memref<8x128xf32, #tpu.memory_space<vmem>>) attributes {dimension_semantics = [#tpu.dimension_semantics<parallel>], iteration_bounds = array<i64: 2>, scalar_prefetch = 0 : i64, scratch_operands = 0 : i64, tpu.core_type = #tpu.core_type<tc>, window_params = [{transform_indices = @transform_0, window_bounds = array<i64: 8, 256>}, {pipeline_mode = #tpu.pipeline_mode<synchronous>, transform_indices = @transform_1, window_bounds = array<i64: 256, 256>}, {pipeline_mode = #tpu.pipeline_mode<synchronous>, transform_indices = @transform_2, window_bounds = array<i64: 256, 128>}, {pipeline_mode = #tpu.pipeline_mode<synchronous>, transform_indices = @transform_3, window_bounds = array<i64: 1, 128>}, {pipeline_mode = #tpu.pipeline_mode<synchronous>, transform_indices = @transform_4, window_bounds = array<i64: 256, 128>}, {pipeline_mode = #tpu.pipeline_mode<synchronous>, transform_indices = @transform_5, window_bounds = array<i64: 1, 128>}, {transform_indices = @transform_6, window_bounds = array<i64: 8, 128>}, {transform_indices = @transform_7, window_bounds = array<i64: 8, 128>}]} {
    %c0 = arith.constant 0 : index
    %c0_0 = arith.constant 0 : index
    %0 = vector.load %arg1[%c0, %c0_0] : memref<8x256xf32, #tpu.memory_space<vmem>>, vector<8x256xf32>
    %1 = arith.truncf %0 : vector<8x256xf32> to vector<8x256xbf16>
    %c0_1 = arith.constant 0 : index
    %c0_2 = arith.constant 0 : index
    %2 = vector.load %arg2[%c0_1, %c0_2] : memref<256x256xbf16, #tpu.memory_space<vmem>>, vector<256x256xbf16>
    %cst = arith.constant dense<0.000000e+00> : vector<8x256xf32>
    %3 = tpu.matmul %1, %2, %cst {dimension_numbers = #tpu.dot_dimension_numbers<[1], [0], [0], [1], [0, 0, 1, 1], [], []>} : vector<8x256xbf16>, vector<256x256xbf16>, vector<8x256xf32> -> vector<8x256xf32>
    %4 = arith.truncf %3 : vector<8x256xf32> to vector<8x256xbf16>
    %c0_3 = arith.constant 0 : index
    %c0_4 = arith.constant 0 : index
    %5 = vector.load %arg3[%c0_3, %c0_4] : memref<256x128xbf16, #tpu.memory_space<vmem>>, vector<256x128xbf16>
    %cst_5 = arith.constant dense<0.000000e+00> : vector<8x128xf32>
    %6 = tpu.matmul %4, %5, %cst_5 {dimension_numbers = #tpu.dot_dimension_numbers<[1], [0], [0], [1], [0, 0, 1, 1], [], []>} : vector<8x256xbf16>, vector<256x128xbf16>, vector<8x128xf32> -> vector<8x128xf32>
    %c0_6 = arith.constant 0 : index
    %c0_7 = arith.constant 0 : index
    %7 = vector.load %arg4[%c0_6, %c0_7] : memref<1x128xf32, #tpu.memory_space<vmem>>, vector<1x128xf32>
    %8 = vector.broadcast %7 : vector<1x128xf32> to vector<8x128xf32>
    %9 = arith.addf %6, %8 : vector<8x128xf32>
    %c0_8 = arith.constant 0 : index
    %c0_9 = arith.constant 0 : index
    %10 = vector.load %arg7[%c0_8, %c0_9] : memref<8x128xf32, #tpu.memory_space<vmem>>, vector<8x128xf32>
    tpu.vector_store %arg7[%c0_8, %c0_9], %9 {strides = array<i32>} : memref<8x128xf32, #tpu.memory_space<vmem>>, vector<8x128xf32>,
    %c0_10 = arith.constant 0 : index
    %c0_11 = arith.constant 0 : index
    %11 = vector.load %arg5[%c0_10, %c0_11] : memref<256x128xbf16, #tpu.memory_space<vmem>>, vector<256x128xbf16>
    %cst_12 = arith.constant dense<0.000000e+00> : vector<8x128xf32>
    %12 = tpu.matmul %1, %11, %cst_12 {dimension_numbers = #tpu.dot_dimension_numbers<[1], [0], [0], [1], [0, 0, 1, 1], [], []>} : vector<8x256xbf16>, vector<256x128xbf16>, vector<8x128xf32> -> vector<8x128xf32>
    %c0_13 = arith.constant 0 : index
    %c0_14 = arith.constant 0 : index
    %13 = vector.load %arg6[%c0_13, %c0_14] : memref<1x128xf32, #tpu.memory_space<vmem>>, vector<1x128xf32>
    %14 = vector.broadcast %13 : vector<1x128xf32> to vector<8x128xf32>
    %15 = arith.addf %12, %14 : vector<8x128xf32>
    %c0_15 = arith.constant 0 : index
    %c0_16 = arith.constant 0 : index
    %16 = vector.load %arg8[%c0_15, %c0_16] : memref<8x128xf32, #tpu.memory_space<vmem>>, vector<8x128xf32>
    tpu.vector_store %arg8[%c0_15, %c0_16], %15 {strides = array<i32>} : memref<8x128xf32, #tpu.memory_space<vmem>>, vector<8x128xf32>,
    return
  }
  func.func @transform_0(%arg0: i32) -> (i32, i32) {
    %c0_i32 = arith.constant 0 : i32
    %c0_i32_0 = arith.constant 0 : i32
    return %arg0, %c0_i32 : i32, i32
  }
  func.func @transform_1(%arg0: i32) -> (i32, i32) {
    %c0_i32 = arith.constant 0 : i32
    %c0_i32_0 = arith.constant 0 : i32
    %c0_i32_1 = arith.constant 0 : i32
    return %c0_i32, %c0_i32_0 : i32, i32
  }
  func.func @transform_2(%arg0: i32) -> (i32, i32) {
    %c0_i32 = arith.constant 0 : i32
    %c0_i32_0 = arith.constant 0 : i32
    %c0_i32_1 = arith.constant 0 : i32
    return %c0_i32, %c0_i32_0 : i32, i32
  }
  func.func @transform_3(%arg0: i32) -> (i32, i32) {
    %c0_i32 = arith.constant 0 : i32
    %c0_i32_0 = arith.constant 0 : i32
    %c0_i32_1 = arith.constant 0 : i32
    return %c0_i32, %c0_i32_0 : i32, i32
  }
  func.func @transform_4(%arg0: i32) -> (i32, i32) {
    %c0_i32 = arith.constant 0 : i32
    %c0_i32_0 = arith.constant 0 : i32
    %c0_i32_1 = arith.constant 0 : i32
    return %c0_i32, %c0_i32_0 : i32, i32
  }
  func.func @transform_5(%arg0: i32) -> (i32, i32) {
    %c0_i32 = arith.constant 0 : i32
    %c0_i32_0 = arith.constant 0 : i32
    %c0_i32_1 = arith.constant 0 : i32
    return %c0_i32, %c0_i32_0 : i32, i32
  }
  func.func @transform_6(%arg0: i32) -> (i32, i32) {
    %c0_i32 = arith.constant 0 : i32
    %c0_i32_0 = arith.constant 0 : i32
    return %arg0, %c0_i32 : i32, i32
  }
  func.func @transform_7(%arg0: i32) -> (i32, i32) {
    %c0_i32 = arith.constant 0 : i32
    %c0_i32_0 = arith.constant 0 : i32
    return %arg0, %c0_i32 : i32, i32
  }
}

</mosaic_0001>

<bundles_post_ra>
// kernel: hpm_dubb_1_forward.1
= control target key start
LH: loop header
LB: loop body
LE: loop exit
PB: predicated region body
PF: predicated region fallthrough
CT: control target
= control target key end

     0   :  { %s1222_s24 = smov 0   ;;  %s1452_s0 = inlined_call_operand.vmem [shape: f32[16,256], index: 0, kind: input, shape index: {}]   ;;  %s1453_s1 = inlined_call_operand.vmem [shape: bf16[256,256], index: 1, kind: input, shape index: {}]   ;;  %s1454_s2 = inlined_call_operand.vmem [shape: bf16[256,128], index: 2, kind: input, shape index: {}]   ;;  %s1455_s3 = inlined_call_operand.vmem [shape: f32[1,128], index: 3, kind: input, shape index: {}]   ;;  %s1456_s4 = inlined_call_operand.vmem [shape: bf16[256,128], index: 4, kind: input, shape index: {}]   ;;  %s1457_s5 = inlined_call_operand.vmem [shape: f32[1,128], index: 5, kind: input, shape index: {}]   ;;  %s1458_s6 = inlined_call_operand.vmem [shape: f32[16,128], index: 6, kind: output, shape index: {0}]   ;;  %s1459_s7 = inlined_call_operand.vmem [shape: f32[16,128], index: 7, kind: output, shape index: {1}]  }
   0x1 LB: > { %s964_s25 = sadd.s32 4294967295, %s1180_s24   ;;  %p968_p0 = scmp.ge.s32.totalorder %s1180_s24, 1  ;;  %s1180_s24 = sphi %s1222_s24, %s18_s24  }
   0x2   : > { %p240_p1 = scmp.lt.s32.totalorder %s1180_s24, 3 }
   0x4   : > { %p241_p2 = pnand %p968_p0, %p240_p1 }
   0x5   : > { %p275_p3 = scmp.lt.s32.totalorder (!%p241_p2), %s964_s25, 1 }
   0x6   : > { %244 = sbr.rel (%p241_p2) target bundleno = 506 (0x1fa), region = 44 }
   0xb   : > { %v1094_v0 = vld [vmem:[%s1453_s1 + $0x74] ss:$8 sps:$4 sm:$0xff]   ;;  %v1096_v1 = vld [vmem:[%s1453_s1 + $0x70] ss:$8 sps:$4 sm:$0xff]   ;;  %v1097_v2 = vld [vmem:[%s1453_s1 + $0x64] ss:$8 sps:$4 sm:$0xff]  }
   0xc   : > { %485 = vmatprep.subr.bf16.mxu0 %v1094_v0  ;;  %v1099_v3 = vld [vmem:[%s1453_s1 + $0x60] ss:$8 sps:$4 sm:$0xff]   ;;  %v1100_v4 = vld [vmem:[%s1453_s1 + $0x54] ss:$8 sps:$4 sm:$0xff]   ;;  %v1102_v5 = vld [vmem:[%s1453_s1 + $0x50] ss:$8 sps:$4 sm:$0xff]  }
   0xd   : > { %486 = vmatpush1.bf16.msra.mxu0 %v1096_v1  ;;  %v1103_v6 = vld [vmem:[%s1453_s1 + $0x44] ss:$8 sps:$4 sm:$0xff]   ;;  %v1105_v7 = vld [vmem:[%s1453_s1 + $0x40] ss:$8 sps:$4 sm:$0xff]   ;;  %s1461_s25 = smov (!%p275_p3, %s964_s25), 1  ;;  %v1142_v17 = vld [vmem:[%s1454_s2 + $0x78] sm:$0xff]  }
   0xe   : > { %487 = vmatprep.subr.bf16.mxu0 %v1097_v2  ;;  %v1106_v8 = vld [vmem:[%s1453_s1 + $0x34] ss:$8 sps:$4 sm:$0xff]   ;;  %v1108_v9 = vld [vmem:[%s1453_s1 + $0x30] ss:$8 sps:$4 sm:$0xff]   ;;  %s1041_s23 = sshll.u32 %s1461_s25, 4  ;;  %1042 = vmatprep.subr.bf16.mxu1 %v1142_v17  ;;  %v1146_v22 = vld [vmem:[%s1454_s2 + $0x68] sm:$0xff]  }
   0xf   : > { %v1109_v10 = vld [vmem:[%s1453_s1 + $0x24] ss:$8 sps:$4 sm:$0xff]   ;;  %s1269_s30 = scalar_lea.vmem %s1452_s0, %s1041_s23  ;;  %v1111_v11 = vld [vmem:[%s1453_s1 + $0x20] ss:$8 sps:$4 sm:$0xff]   ;;  %v1112_v12 = vld [vmem:[%s1453_s1 + $0x14] ss:$8 sps:$4 sm:$0xff]  }
  0x10   : > { %v1114_v13 = vld [vmem:[%s1453_s1 + $0x10] ss:$8 sps:$4 sm:$0xff]   ;;  %v290_v14 = vld [vmem:[%s1269_s30 + $0x8] sm:$0xff]  ;;  %v1118_v23 = vld [vmem:[%s1453_s1 + $0xf4] ss:$8 sps:$4 sm:$0xff]   ;;  %s971_s12 = sshll.u32 %s1461_s25, 3 }
  0x11   : > { %488 = vmatpush1.bf16.msra.mxu0 %v1099_v3  ;;  %v1115_v15 = vld [vmem:[%s1453_s1 + $0x4] ss:$8 sps:$4 sm:$0xff]   ;;  %v1284_v16 = vpack.c.bf16 %v290_v14, %v290_v14  ;;  %v1143_v18 = vld [vmem:[%s1454_s2 + $0x38] sm:$0xff]   ;;  %v1144_v19 = vld [vmem:[%s1454_s2 + $0x70] sm:$0xff]   ;;  %s283_s17 = scalar_lea.vmem %s1458_s6, %s971_s12  ;;  %s287_s21 = scalar_lea.vmem %s1459_s7, %s971_s12 }
  0x12   : > { %489 = vmatprep.subr.bf16.mxu0 %v1100_v4  ;;  %v1117_v20 = vld [vmem:[%s1453_s1] ss:$8 sps:$4 sm:$0xff]   ;;  %1043 = vmatpush3.bf16.msra.mxu1 %v1143_v18  ;;  %v1145_v21 = vld [vmem:[%s1454_s2 + $0x30] sm:$0xff]   ;;  %v1121_v27 = vld [vmem:[%s1453_s1 + $0xe4] ss:$8 sps:$4 sm:$0xff]  }
  0x13   : > { %517 = vmatprep.mubr.bf16.mxu0 %v1284_v16  ;;  %1044 = vmatprep.subr.bf16.mxu1 %v1144_v19  ;;  %v1120_v24 = vld [vmem:[%s1453_s1 + $0xf0] ss:$8 sps:$4 sm:$0xff]   ;;  %v1147_v25 = vld [vmem:[%s1454_s2 + $0x28] sm:$0xff]   ;;  %v1148_v26 = vld [vmem:[%s1454_s2 + $0x60] sm:$0xff]  }
  0x14   : > { %v1123_v28 = vld [vmem:[%s1453_s1 + $0xe0] ss:$8 sps:$4 sm:$0xff]   ;;  %v1124_v29 = vld [vmem:[%s1453_s1 + $0xd4] ss:$8 sps:$4 sm:$0xff]   ;;  %v1126_v33 = vld [vmem:[%s1453_s1 + $0xd0] ss:$8 sps:$4 sm:$0xff]  }
  0x15   : > { %490 = vmatpush1.bf16.msra.mxu0 %v1102_v5  ;;  %v1149_v30 = vld [vmem:[%s1454_s2 + $0x20] sm:$0xff]   ;;  %v1150_v31 = vld [vmem:[%s1454_s2 + $0x58] sm:$0xff]   ;;  %v1152_v34 = vld [vmem:[%s1454_s2 + $0x50] sm:$0xff]  }
  0x16   : > { %491 = vmatprep.subr.bf16.mxu0 %v1103_v6  ;;  %1045 = vmatpush3.bf16.msra.mxu1 %v1145_v21  ;;  %v1151_v32 = vld [vmem:[%s1454_s2 + $0x18] sm:$0xff]   ;;  %v1127_v35 = vld [vmem:[%s1453_s1 + $0xc4] ss:$8 sps:$4 sm:$0xff]   ;;  %v1153_v36 = vld [vmem:[%s1454_s2 + $0x10] sm:$0xff]  }
  0x17   : > { %1046 = vmatprep.subr.bf16.mxu1 %v1146_v22  ;;  %v1129_v37 = vld [vmem:[%s1453_s1 + $0xc0] ss:$8 sps:$4 sm:$0xff]   ;;  %v1130_v39 = vld [vmem:[%s1453_s1 + $0xb4] ss:$8 sps:$4 sm:$0xff]   ;;  %v1132_v41 = vld [vmem:[%s1453_s1 + $0xb0] ss:$8 sps:$4 sm:$0xff]  }
  0x18   : > { %v1154_v38 = vld [vmem:[%s1454_s2 + $0x48] sm:$0xff]   ;;  %v1136_v44 = vld [vmem:[%s1453_s1 + $0x94] ss:$8 sps:$4 sm:$0xff]   ;;  %v1138_v45 = vld [vmem:[%s1453_s1 + $0x90] ss:$8 sps:$4 sm:$0xff]  }
  0x19   : > { %492 = vmatpush1.bf16.msra.mxu0 %v1105_v7  ;;  %v1155_v40 = vld [vmem:[%s1454_s2 + $0x8] sm:$0xff]   ;;  %v289_v48 = vld [vmem:[%s1269_s30] sm:$0xff]  ;;  %v1158_v52 = vld [vmem:[%s1456_s4 + $0x78] sm:$0xff]  }
  0x1a   : > { %493 = vmatprep.subr.bf16.mxu0 %v1106_v8  ;;  %1047 = vmatpush3.bf16.msra.mxu1 %v1147_v25  ;;  %v1133_v42 = vld [vmem:[%s1453_s1 + $0xa4] ss:$8 sps:$4 sm:$0xff]   ;;  %v1135_v43 = vld [vmem:[%s1453_s1 + $0xa0] ss:$8 sps:$4 sm:$0xff]   ;;  %v291_v49 = vpack.c.bf16 %v289_v48, %v289_v48  ;;  %v1159_v56 = vld [vmem:[%s1456_s4 + $0x38] sm:$0xff]  }
  0x1b   : > { %1048 = vmatprep.subr.bf16.mxu1 %v1148_v26  ;;  %v1139_v46 = vld [vmem:[%s1453_s1 + $0x84] ss:$8 sps:$4 sm:$0xff]   ;;  %v1141_v47 = vld [vmem:[%s1453_s1 + $0x80] ss:$8 sps:$4 sm:$0xff]   ;;  %v1160_v59 = vld [vmem:[%s1456_s4 + $0x70] sm:$0xff]  }
  0x1c   : > { %v1156_v50 = vld [vmem:[%s1454_s2 + $0x40] sm:$0xff]   ;;  %v1161_v61 = vld [vmem:[%s1456_s4 + $0x30] sm:$0xff]   ;;  %v1162_v62 = vld [vmem:[%s1456_s4 + $0x68] sm:$0xff]  }
  0x1d   : > { %494 = vmatpush1.bf16.msra.mxu0 %v1108_v9  ;;  %v1157_v51 = vld [vmem:[%s1454_s2] sm:$0xff]   ;;  %v1163_v63 = vld [vmem:[%s1456_s4 + $0x28] sm:$0xff]   ;;  %v1166_v2 = vld [vmem:[%s1456_s4 + $0x58] sm:$0xff]  }
  0x1e   : > { %495 = vmatprep.subr.bf16.mxu0 %v1109_v10  ;;  %1049 = vmatpush3.bf16.msra.mxu1 %v1149_v30  ;;  %v1164_v0 = vld [vmem:[%s1456_s4 + $0x60] sm:$0xff]   ;;  %v1167_v3 = vld [vmem:[%s1456_s4 + $0x18] sm:$0xff]   ;;  %v1168_v4 = vld [vmem:[%s1456_s4 + $0x50] sm:$0xff]  }
  0x1f   : > { %1050 = vmatprep.subr.bf16.mxu1 %v1150_v31  ;;  %v1165_v1 = vld [vmem:[%s1456_s4 + $0x20] sm:$0xff]   ;;  %v1169_v5 = vld [vmem:[%s1456_s4 + $0x10] sm:$0xff]   ;;  %v1170_v6 = vld [vmem:[%s1456_s4 + $0x48] sm:$0xff]  }
  0x20   : > { %v1171_v7 = vld [vmem:[%s1456_s4 + $0x8] sm:$0xff]   ;;  %v1172_v8 = vld [vmem:[%s1456_s4 + $0x40] sm:$0xff]  }
  0x21   : > { %496 = vmatpush1.bf16.msra.mxu0 %v1111_v11  ;;  %v1173_v9 = vld [vmem:[%s1456_s4] sm:$0xff]  }
  0x22   : > { %497 = vmatprep.subr.bf16.mxu0 %v1112_v12  ;;  %1051 = vmatpush3.bf16.msra.mxu1 %v1151_v32  ;;  %v1005_v11 = vld [vmem:[%s1455_s3] ss:$0 sm:$0xff] }
  0x23   : > { %1052 = vmatprep.subr.bf16.mxu1 %v1152_v34  ;;  %v1022_v18 = vld [vmem:[%s1457_s5] ss:$0 sm:$0xff] }
  0x25   : > { %498 = vmatpush1.bf16.msra.mxu0 %v1114_v13 }
  0x26   : > { %499 = vmatprep.subr.bf16.mxu0 %v1115_v15  ;;  %1053 = vmatpush3.bf16.msra.mxu1 %v1153_v36 }
  0x27   : > { %1054 = vmatprep.subr.bf16.mxu1 %v1154_v38 }
  0x29   : > { %500 = vmatpush1.bf16.msra.mxu0 %v1117_v20 }
  0x2a   : > { %501 = vmatprep.subr.bf16.mxu0 %v1118_v23  ;;  %1055 = vmatpush3.bf16.msra.mxu1 %v1155_v40 }
  0x2b   : > { %1056 = vmatprep.subr.bf16.mxu1 %v1156_v50 }
  0x2d   : > { %502 = vmatpush2.bf16.msra.mxu0 %v1120_v24 }
  0x2e   : > { %503 = vmatprep.subr.bf16.mxu0 %v1121_v27  ;;  %1057 = vmatpush3.bf16.msra.mxu1 %v1157_v51 }
  0x2f   : > { %1064 = vmatprep.subr.bf16.mxu1 %v1158_v52 }
  0x31   : > { %504 = vmatpush2.bf16.msra.mxu0 %v1123_v28 }
  0x32   : > { %505 = vmatprep.subr.bf16.mxu0 %v1124_v29 }
  0x35   : > { %506 = vmatpush2.bf16.msra.mxu0 %v1126_v33 }
  0x36   : > { %507 = vmatprep.subr.bf16.mxu0 %v1127_v35 }
  0x39   : > { %508 = vmatpush2.bf16.msra.mxu0 %v1129_v37 }
  0x3a   : > { %509 = vmatprep.subr.bf16.mxu0 %v1130_v39 }
  0x3d   : > { %510 = vmatpush2.bf16.msra.mxu0 %v1132_v41 }
  0x3e   : > { %511 = vmatprep.subr.bf16.mxu0 %v1133_v42 }
  0x41   : > { %512 = vmatpush2.bf16.msra.mxu0 %v1135_v43 }
  0x42   : > { %513 = vmatprep.subr.bf16.mxu0 %v1136_v44 }
  0x45   : > { %514 = vmatpush2.bf16.msra.mxu0 %v1138_v45 }
  0x46   : > { %515 = vmatprep.subr.bf16.mxu0 %v1139_v46 }
  0x49   : > { %516 = vmatpush2.bf16.msra.mxu0 %v1141_v47 }
  0x4c   : > { %518 = vmatmul.mubr.bf16.vlgmr.msra.gmra.mxu0 %v291_v49 }
 0x10c   : > { %v519_v53 = vpop.f32.mrf.mxu0 }
 0x10d   : > { %v526_v57 = vpack.c.bf16 %v519_v53, %v519_v53 }
 0x10e   : > { %v521_v54 = vpop.f32.mrf.mxu0 }
 0x10f   : > { %v527_v55 = vpack.c.bf16 %v521_v54, %v521_v54 }
 0x110   : > { %v523_v58 = vpop.f32.mrf.mxu0 }
 0x111   : > { %695 = vmatprep.mubr.bf16.mxu1 %v527_v55 }
 0x112   : > { %v524_v60 = vpop.f32.mrf.mxu0  ;;  %696 = vmatmul.mubr.bf16.vlgmr.msra.gmra.mxu1 %v526_v57 }
 0x113   : > { %1065 = vmatpush3.bf16.msra.mxu1 %v1159_v56  ;;  %871 = vmatprep.mubr.bf16.mxu1 %v1284_v16 }
 0x114   : > { %1066 = vmatprep.subr.bf16.mxu1 %v1160_v59 }
 0x117   : > { %1067 = vmatpush3.bf16.msra.mxu1 %v1161_v61 }
 0x118   : > { %1068 = vmatprep.subr.bf16.mxu1 %v1162_v62 }
 0x11b   : > { %1069 = vmatpush3.bf16.msra.mxu1 %v1163_v63 }
 0x11c   : > { %1070 = vmatprep.subr.bf16.mxu1 %v1164_v0 }
 0x11f   : > { %1071 = vmatpush3.bf16.msra.mxu1 %v1165_v1 }
 0x120   : > { %1072 = vmatprep.subr.bf16.mxu1 %v1166_v2 }
 0x123   : > { %1073 = vmatpush3.bf16.msra.mxu1 %v1167_v3 }
 0x124   : > { %1074 = vmatprep.subr.bf16.mxu1 %v1168_v4 }
 0x127   : > { %1075 = vmatpush3.bf16.msra.mxu1 %v1169_v5 }
 0x128   : > { %1076 = vmatprep.subr.bf16.mxu1 %v1170_v6 }
 0x12b   : > { %1077 = vmatpush3.bf16.msra.mxu1 %v1171_v7 }
 0x12c   : > { %1078 = vmatprep.subr.bf16.mxu1 %v1172_v8 }
 0x12f   : > { %1079 = vmatpush3.bf16.msra.mxu1 %v1173_v9 }
 0x132   : > { %872 = vmatmul.mubr.bf16.vlgmr.msra.gmra.mxu1 %v291_v49 }
 0x1d2   : > { %v1058_v10 = vpop.f32.mrf.mxu1 }
 0x1d4   : > { %v1059_v12 = vpop.f32.mrf.mxu1 }
 0x1d5   : > { %v1060_v13 = vadd.f32 %v1059_v12, %v1058_v10 }
 0x1d6   : > { %v1061_v14 = vpop.f32.mrf.mxu1 }
 0x1d7   : > { %v698_v15 = vadd.f32 %v1060_v13, %v1005_v11 }
 0x1d8   : > { %v1062_v16 = vpop.f32.mrf.mxu1 }
 0x1d9   : > { %703 = vst [vmem:[%s283_s17] sm:$0xff] %v698_v15 }
 0x1f2   : > { %v1080_v17 = vpop.f32.mrf.mxu1 }
 0x1f4   : > { %v1081_v19 = vpop.f32.mrf.mxu1 }
 0x1f5   : > { %v1082_v20 = vadd.f32 %v1081_v19, %v1080_v17 }
 0x1f6   : > { %v1083_v21 = vpop.f32.mrf.mxu1 }
 0x1f7   : > { %v874_v22 = vadd.f32 %v1082_v20, %v1022_v18 }
 0x1f8   : > { %v1084_v23 = vpop.f32.mrf.mxu1 }
 0x1f9   : > { %879 = vst [vmem:[%s287_s21] sm:$0xff] %v874_v22 }
 0x1fa PF: > { %s18_s24 = sadd.s32 1, %s1180_s24  }
 0x1fb   : > { %p15_p4 = scmp.ge.s32.totalorder %s18_s24, 4  }
 0x1fd   :  { %17 = sbr.rel (!%p15_p4) target bundleno = 1 (0x1), region = 86 }

</bundles_post_ra>
